<compile_context>
chip_gen: v6e
topology: v6e:2x2x1
jax: 0.10.0
libtpu: 0.0.40
codegen_flags: <defaults>
</compile_context>

<pallas_src>
from functools import partial

import jax
import jax.numpy as jnp
from jax.experimental import pallas as pl
from jax.experimental.pallas import tpu as pltpu


def _lstm_seq_kernel(seed_ref, x_ref, w_ih_ref, b_ref, w_hh_ref, w_fc_ref, b_fc_ref,
                     y_ref, h_all_scr, *, seq_len, batch, dropout_p):
    """Whole-sequence (time-major) LSTM + dropout + FC in a single kernel invocation."""
    f32 = jnp.float32
    T = seq_len
    B = batch
    H = w_hh_ref.shape[0]
    TB = T * B

    # ---- Input projection for every time step: one lane-dense (T*B, D)@(D, 128) matmul. ----
    xg = jnp.dot(x_ref[...], w_ih_ref[...], preferred_element_type=f32) + b_ref[...]

    w_hh = w_hh_ref[...]                     # (H, 4H) fused recurrent weights, loaded once

    h = jnp.zeros((B, H), f32)
    c = jnp.zeros((B, H), f32)

    # Fully-unrolled time recurrence (T is small & static): zero per-step grid overhead.
    for t in range(T):
        # One full-width recurrent matmul per step: (B, H) @ (H, 4H=128).
        pre = xg[t * B:(t + 1) * B, :] + jnp.dot(h, w_hh, preferred_element_type=f32)
        # Batched activations: one full-width sigmoid + one tanh on the g slice.
        sig = jax.nn.sigmoid(pre)            # gates ordered [i | f | g | o]
        i_t = sig[:, 0 * H:1 * H]
        f_t = sig[:, 1 * H:2 * H]
        o_t = sig[:, 3 * H:4 * H]
        g_t = jnp.tanh(pre[:, 2 * H:3 * H])
        c = f_t * c + i_t * g_t
        h = o_t * jnp.tanh(c)
        h_all_scr[t * B:(t + 1) * B, :] = h  # contiguous 8-sublane block store

    h_all = h_all_scr[...]                   # (T*B, H)

    # ---- Inverted dropout: 0/1 mask generated on-chip with a pure-jnp integer hash. ----
    # The 1/keep_p scale is folded into w_fc by the wrapper, so the mask is pure 0/1.
    # TODO(synk): torch's dropout RNG stream cannot be reproduced; this is a statistically
    # equivalent Bernoulli(keep_p) mask derived from a counter hash (works on Mosaic and
    # in interpret mode, unlike pltpu.prng_*).
    if dropout_p > 0.0:
        keep_p = 1.0 - dropout_p
        seed_u = seed_ref[0].astype(jnp.uint32)
        rows = jax.lax.broadcasted_iota(jnp.uint32, (TB, H), 0)
        cols = jax.lax.broadcasted_iota(jnp.uint32, (TB, H), 1)
        v = rows * jnp.uint32(H) + cols + seed_u * jnp.uint32(0x9E3779B9)
        v = (v ^ (v >> jnp.uint32(16))) * jnp.uint32(0x7FEB352D)
        v = (v ^ (v >> jnp.uint32(15))) * jnp.uint32(0x846CA68B)
        v = v ^ (v >> jnp.uint32(16))
        mant = (v >> jnp.uint32(9)) | jnp.uint32(0x3F800000)       # float in [1, 2)
        u01 = jax.lax.bitcast_convert_type(mant, jnp.float32) - f32(1.0)
        keep = (u01 < f32(keep_p)).astype(f32)
        h_all = h_all * keep

    # ---- Final linear layer: one matmul + one lane-dense (T*B, 128) output store. ----
    y = jnp.dot(h_all, w_fc_ref[...], preferred_element_type=f32) + b_fc_ref[...]
    y_ref[...] = y.astype(y_ref.dtype)


def lstm_forward(x, params, *, seed=0, p=0.2):
    """x: (B, T, input_dim) f32 (batch_first) -> (B, T, output_dim) f32."""
    B, T, D = x.shape
    H = params["w_hh"].shape[0]
    O = params["w_fc"].shape[-1]
    O_PAD = 128                                            # lane-dense output width

    # Time-major layout: (T, B, D) -> (T*B, D); transposed back at the end.
    x_tm = jnp.transpose(x, (1, 0, 2)).reshape(T * B, D)

    # Fold the inverted-dropout 1/keep_p scale into the FC weight (not the bias), and pad
    # the FC weight/bias to 128 output lanes so the kernel's final store is unmasked.
    w_fc = params["w_fc"] if p == 0.0 else params["w_fc"] / jnp.float32(1.0 - p)
    w_fc_pad = jnp.zeros((H, O_PAD), jnp.float32).at[:, :O].set(w_fc)
    b_fc_pad = jnp.zeros((1, O_PAD), jnp.float32).at[:, :O].set(params["b_fc"])

    seed_arr = jnp.asarray([seed], dtype=jnp.int32)

    kernel = partial(_lstm_seq_kernel, seq_len=T, batch=B, dropout_p=float(p))
    vmem = pl.BlockSpec(memory_space=pltpu.MemorySpace.VMEM)

    y_flat = pl.pallas_call(
        kernel,
        out_shape=jax.ShapeDtypeStruct((T * B, O_PAD), jnp.float32),
        in_specs=[
            pl.BlockSpec(memory_space=pltpu.MemorySpace.SMEM),   # dropout seed   (1,)
            vmem,                                                # x time-major   (T*B, D)
            vmem,                                                # W_ih^T         (D, 4H)
            vmem,                                                # b_ih + b_hh    (1, 4H)
            vmem,                                                # W_hh^T fused   (H, 4H)
            vmem,                                                # W_fc^T padded  (H, 128)
            vmem,                                                # b_fc padded    (1, 128)
        ],
        out_specs=vmem,
        scratch_shapes=[pltpu.VMEM((T * B, H), jnp.float32)],    # per-step hidden states
    )(seed_arr, x_tm, params["w_ih"], params["b"], params["w_hh"], w_fc_pad, b_fc_pad)

    y = y_flat.reshape(T, B, O_PAD)[:, :, :O]
    return jnp.transpose(y, (1, 0, 2))                     # back to (B, T, O)


def init_params(key, input_dim, hidden_dim, output_dim):
    """PyTorch-style uniform(-1/sqrt(H), 1/sqrt(H)) init; weights stored transposed.

    w_ih : (D, 4H)   gates ordered [i | f | g | o] along the 4H axis
    w_hh : (H, 4H)   fused recurrent weights (= torch W_hh^T)
    b    : (1, 4H)   b_ih + b_hh pre-summed
    w_fc : (H, O), b_fc: (1, O)
    """
    k = 1.0 / jnp.sqrt(jnp.float32(hidden_dim))
    ks = jax.random.split(key, 6)
    u = lambda kk, shape: jax.random.uniform(kk, shape, jnp.float32, -k, k)
    w_ih = u(ks[0], (4 * hidden_dim, input_dim)).T                         # (D, 4H)
    w_hh = u(ks[1], (4 * hidden_dim, hidden_dim)).T                        # (H, 4H)
    b = (u(ks[2], (4 * hidden_dim,)) + u(ks[3], (4 * hidden_dim,)))[None, :]
    w_fc = u(ks[4], (output_dim, hidden_dim)).T                            # (H, O)
    b_fc = u(ks[5], (output_dim,))[None, :]                                # (1, O)
    return dict(w_ih=w_ih, w_hh=w_hh, b=b, w_fc=w_fc, b_fc=b_fc)


def _reference_no_dropout(x, params):
    """Pure-JAX LSTM + FC (no dropout) reference for the p=0 correctness check."""
    B, T, D = x.shape
    H = params["w_hh"].shape[0]

    def step(carry, x_t):
        h, c = carry
        gates = x_t @ params["w_ih"] + h @ params["w_hh"] + params["b"]
        i_g = jax.nn.sigmoid(gates[:, 0 * H:1 * H])
        f_g = jax.nn.sigmoid(gates[:, 1 * H:2 * H])
        g_g = jnp.tanh(gates[:, 2 * H:3 * H])
        o_g = jax.nn.sigmoid(gates[:, 3 * H:4 * H])
        c_new = f_g * c + i_g * g_g
        h_new = o_g * jnp.tanh(c_new)
        y_t = h_new @ params["w_fc"] + params["b_fc"]
        return (h_new, c_new), y_t

    x_tbd = jnp.transpose(x, (1, 0, 2))
    init = (jnp.zeros((B, H), jnp.float32), jnp.zeros((B, H), jnp.float32))
    _, y = jax.lax.scan(step, init, x_tbd)
    return jnp.transpose(y, (1, 0, 2))


if __name__ == "__main__":
    # batch (sublane-aligned), seq_len, input_dim, hidden_dim, output_dim
    B, T, D, H, O = 8, 8, 8, 32, 1

    root = jax.random.PRNGKey(0)
    k_param, k_x = jax.random.split(root, 2)
    params = init_params(k_param, D, H, O)
    x = jax.random.normal(k_x, (B, T, D), jnp.float32)

    # 1) p = 0: exact comparison against the pure-JAX LSTM + FC reference.
    out_nodrop = jax.block_until_ready(lstm_forward(x, params, seed=0, p=0.0))
    ref = jax.block_until_ready(_reference_no_dropout(x, params))
    assert out_nodrop.shape == (B, T, O), out_nodrop.shape
    assert jnp.allclose(out_nodrop, ref, atol=1e-4, rtol=1e-4), \
        float(jnp.max(jnp.abs(out_nodrop - ref)))

    # 2) p = 0.2: exercise the in-kernel hash-PRNG dropout path (torch RNG not reproducible).
    out = jax.block_until_ready(lstm_forward(x, params, seed=1234, p=0.2))
    assert out.shape == (B, T, O), out.shape
    assert bool(jnp.all(jnp.isfinite(out)))

    print("KERNEL_OK")
</pallas_src>

<mosaic_0001>
module attributes {stable_mosaic.version = 11 : i64} {
  func.func @_lstm_seq_kernel(%arg0: memref<1xi32, #tpu.memory_space<smem>>, %arg1: memref<64x8xf32, #tpu.memory_space<vmem>>, %arg2: memref<8x128xf32, #tpu.memory_space<vmem>>, %arg3: memref<1x128xf32, #tpu.memory_space<vmem>>, %arg4: memref<32x128xf32, #tpu.memory_space<vmem>>, %arg5: memref<32x128xf32, #tpu.memory_space<vmem>>, %arg6: memref<1x128xf32, #tpu.memory_space<vmem>>, %arg7: memref<64x128xf32, #tpu.memory_space<vmem>>, %arg8: memref<64x32xf32, #tpu.memory_space<vmem>>) attributes {dimension_semantics = [], scalar_prefetch = 0 : i64, scratch_operands = 1 : i64, tpu.core_type = #tpu.core_type<tc>} {
    %c0 = arith.constant 0 : index
    %c0_0 = arith.constant 0 : index
    %0 = vector.load %arg1[%c0, %c0_0] : memref<64x8xf32, #tpu.memory_space<vmem>>, vector<64x8xf32>
    %c0_1 = arith.constant 0 : index
    %c0_2 = arith.constant 0 : index
    %1 = vector.load %arg2[%c0_1, %c0_2] : memref<8x128xf32, #tpu.memory_space<vmem>>, vector<8x128xf32>
    %cst = arith.constant dense<0.000000e+00> : vector<64x128xf32>
    %2 = tpu.matmul %0, %1, %cst {dimension_numbers = #tpu.dot_dimension_numbers<[1], [0], [0], [1], [0, 0, 1, 1], [], []>} : vector<64x8xf32>, vector<8x128xf32>, vector<64x128xf32> -> vector<64x128xf32>
    %c0_3 = arith.constant 0 : index
    %c0_4 = arith.constant 0 : index
    %3 = vector.load %arg3[%c0_3, %c0_4] : memref<1x128xf32, #tpu.memory_space<vmem>>, vector<1x128xf32>
    %4 = vector.broadcast %3 : vector<1x128xf32> to vector<64x128xf32>
    %5 = arith.addf %2, %4 : vector<64x128xf32>
    %c0_5 = arith.constant 0 : index
    %c0_6 = arith.constant 0 : index
    %6 = vector.load %arg4[%c0_5, %c0_6] : memref<32x128xf32, #tpu.memory_space<vmem>>, vector<32x128xf32>
    %cst_7 = arith.constant 0.000000e+00 : f32
    %7 = vector.broadcast %cst_7 : f32 to vector<8x32xf32>
    %cst_8 = arith.constant 0.000000e+00 : f32
    %8 = vector.broadcast %cst_8 : f32 to vector<8x32xf32>
    %9 = vector.extract_strided_slice %5 {offsets = [0, 0], sizes = [8, 128], strides = [1, 1]} : vector<64x128xf32> to vector<8x128xf32>
    %cst_9 = arith.constant dense<0.000000e+00> : vector<8x128xf32>
    %10 = tpu.matmul %7, %6, %cst_9 {dimension_numbers = #tpu.dot_dimension_numbers<[1], [0], [0], [1], [0, 0, 1, 1], [], []>} : vector<8x32xf32>, vector<32x128xf32>, vector<8x128xf32> -> vector<8x128xf32>
    %11 = arith.addf %9, %10 : vector<8x128xf32>
    %12 = arith.negf %11 : vector<8x128xf32>
    %13 = math.exp %12 : vector<8x128xf32>
    %cst_10 = arith.constant 1.000000e+00 : f32
    %14 = vector.broadcast %cst_10 : f32 to vector<8x128xf32>
    %15 = arith.addf %14, %13 : vector<8x128xf32>
    %16 = arith.divf %14, %15 : vector<8x128xf32>
    %17 = vector.extract_strided_slice %16 {offsets = [0, 0], sizes = [8, 32], strides = [1, 1]} : vector<8x128xf32> to vector<8x32xf32>
    %18 = vector.extract_strided_slice %16 {offsets = [0, 32], sizes = [8, 32], strides = [1, 1]} : vector<8x128xf32> to vector<8x32xf32>
    %19 = vector.extract_strided_slice %16 {offsets = [0, 96], sizes = [8, 32], strides = [1, 1]} : vector<8x128xf32> to vector<8x32xf32>
    %20 = vector.extract_strided_slice %11 {offsets = [0, 64], sizes = [8, 32], strides = [1, 1]} : vector<8x128xf32> to vector<8x32xf32>
    %21 = math.tanh %20 : vector<8x32xf32>
    %22 = arith.mulf %18, %8 : vector<8x32xf32>
    %23 = arith.mulf %17, %21 : vector<8x32xf32>
    %24 = arith.addf %22, %23 : vector<8x32xf32>
    %25 = math.tanh %24 : vector<8x32xf32>
    %26 = arith.mulf %19, %25 : vector<8x32xf32>
    %c0_11 = arith.constant 0 : index
    %c0_12 = arith.constant 0 : index
    %27 = vector.load %arg8[%c0_11, %c0_12] : memref<64x32xf32, #tpu.memory_space<vmem>>, vector<8x32xf32>
    tpu.vector_store %arg8[%c0_11, %c0_12], %26 {strides = array<i32>} : memref<64x32xf32, #tpu.memory_space<vmem>>, vector<8x32xf32>,
    %28 = vector.extract_strided_slice %5 {offsets = [8, 0], sizes = [8, 128], strides = [1, 1]} : vector<64x128xf32> to vector<8x128xf32>
    %cst_13 = arith.constant dense<0.000000e+00> : vector<8x128xf32>
    %29 = tpu.matmul %26, %6, %cst_13 {dimension_numbers = #tpu.dot_dimension_numbers<[1], [0], [0], [1], [0, 0, 1, 1], [], []>} : vector<8x32xf32>, vector<32x128xf32>, vector<8x128xf32> -> vector<8x128xf32>
    %30 = arith.addf %28, %29 : vector<8x128xf32>
    %31 = arith.negf %30 : vector<8x128xf32>
    %32 = math.exp %31 : vector<8x128xf32>
    %cst_14 = arith.constant 1.000000e+00 : f32
    %33 = vector.broadcast %cst_14 : f32 to vector<8x128xf32>
    %34 = arith.addf %33, %32 : vector<8x128xf32>
    %35 = arith.divf %33, %34 : vector<8x128xf32>
    %36 = vector.extract_strided_slice %35 {offsets = [0, 0], sizes = [8, 32], strides = [1, 1]} : vector<8x128xf32> to vector<8x32xf32>
    %37 = vector.extract_strided_slice %35 {offsets = [0, 32], sizes = [8, 32], strides = [1, 1]} : vector<8x128xf32> to vector<8x32xf32>
    %38 = vector.extract_strided_slice %35 {offsets = [0, 96], sizes = [8, 32], strides = [1, 1]} : vector<8x128xf32> to vector<8x32xf32>
    %39 = vector.extract_strided_slice %30 {offsets = [0, 64], sizes = [8, 32], strides = [1, 1]} : vector<8x128xf32> to vector<8x32xf32>
    %40 = math.tanh %39 : vector<8x32xf32>
    %41 = arith.mulf %37, %24 : vector<8x32xf32>
    %42 = arith.mulf %36, %40 : vector<8x32xf32>
    %43 = arith.addf %41, %42 : vector<8x32xf32>
    %44 = math.tanh %43 : vector<8x32xf32>
    %45 = arith.mulf %38, %44 : vector<8x32xf32>
    %c8 = arith.constant 8 : index
    %c0_15 = arith.constant 0 : index
    %46 = vector.load %arg8[%c8, %c0_15] : memref<64x32xf32, #tpu.memory_space<vmem>>, vector<8x32xf32>
    tpu.vector_store %arg8[%c8, %c0_15], %45 {strides = array<i32>} : memref<64x32xf32, #tpu.memory_space<vmem>>, vector<8x32xf32>,
    %47 = vector.extract_strided_slice %5 {offsets = [16, 0], sizes = [8, 128], strides = [1, 1]} : vector<64x128xf32> to vector<8x128xf32>
    %cst_16 = arith.constant dense<0.000000e+00> : vector<8x128xf32>
    %48 = tpu.matmul %45, %6, %cst_16 {dimension_numbers = #tpu.dot_dimension_numbers<[1], [0], [0], [1], [0, 0, 1, 1], [], []>} : vector<8x32xf32>, vector<32x128xf32>, vector<8x128xf32> -> vector<8x128xf32>
    %49 = arith.addf %47, %48 : vector<8x128xf32>
    %50 = arith.negf %49 : vector<8x128xf32>
    %51 = math.exp %50 : vector<8x128xf32>
    %cst_17 = arith.constant 1.000000e+00 : f32
    %52 = vector.broadcast %cst_17 : f32 to vector<8x128xf32>
    %53 = arith.addf %52, %51 : vector<8x128xf32>
    %54 = arith.divf %52, %53 : vector<8x128xf32>
    %55 = vector.extract_strided_slice %54 {offsets = [0, 0], sizes = [8, 32], strides = [1, 1]} : vector<8x128xf32> to vector<8x32xf32>
    %56 = vector.extract_strided_slice %54 {offsets = [0, 32], sizes = [8, 32], strides = [1, 1]} : vector<8x128xf32> to vector<8x32xf32>
    %57 = vector.extract_strided_slice %54 {offsets = [0, 96], sizes = [8, 32], strides = [1, 1]} : vector<8x128xf32> to vector<8x32xf32>
    %58 = vector.extract_strided_slice %49 {offsets = [0, 64], sizes = [8, 32], strides = [1, 1]} : vector<8x128xf32> to vector<8x32xf32>
    %59 = math.tanh %58 : vector<8x32xf32>
    %60 = arith.mulf %56, %43 : vector<8x32xf32>
    %61 = arith.mulf %55, %59 : vector<8x32xf32>
    %62 = arith.addf %60, %61 : vector<8x32xf32>
    %63 = math.tanh %62 : vector<8x32xf32>
    %64 = arith.mulf %57, %63 : vector<8x32xf32>
    %c16 = arith.constant 16 : index
    %c0_18 = arith.constant 0 : index
    %65 = vector.load %arg8[%c16, %c0_18] : memref<64x32xf32, #tpu.memory_space<vmem>>, vector<8x32xf32>
    tpu.vector_store %arg8[%c16, %c0_18], %64 {strides = array<i32>} : memref<64x32xf32, #tpu.memory_space<vmem>>, vector<8x32xf32>,
    %66 = vector.extract_strided_slice %5 {offsets = [24, 0], sizes = [8, 128], strides = [1, 1]} : vector<64x128xf32> to vector<8x128xf32>
    %cst_19 = arith.constant dense<0.000000e+00> : vector<8x128xf32>
    %67 = tpu.matmul %64, %6, %cst_19 {dimension_numbers = #tpu.dot_dimension_numbers<[1], [0], [0], [1], [0, 0, 1, 1], [], []>} : vector<8x32xf32>, vector<32x128xf32>, vector<8x128xf32> -> vector<8x128xf32>
    %68 = arith.addf %66, %67 : vector<8x128xf32>
    %69 = arith.negf %68 : vector<8x128xf32>
    %70 = math.exp %69 : vector<8x128xf32>
    %cst_20 = arith.constant 1.000000e+00 : f32
    %71 = vector.broadcast %cst_20 : f32 to vector<8x128xf32>
    %72 = arith.addf %71, %70 : vector<8x128xf32>
    %73 = arith.divf %71, %72 : vector<8x128xf32>
    %74 = vector.extract_strided_slice %73 {offsets = [0, 0], sizes = [8, 32], strides = [1, 1]} : vector<8x128xf32> to vector<8x32xf32>
    %75 = vector.extract_strided_slice %73 {offsets = [0, 32], sizes = [8, 32], strides = [1, 1]} : vector<8x128xf32> to vector<8x32xf32>
    %76 = vector.extract_strided_slice %73 {offsets = [0, 96], sizes = [8, 32], strides = [1, 1]} : vector<8x128xf32> to vector<8x32xf32>
    %77 = vector.extract_strided_slice %68 {offsets = [0, 64], sizes = [8, 32], strides = [1, 1]} : vector<8x128xf32> to vector<8x32xf32>
    %78 = math.tanh %77 : vector<8x32xf32>
    %79 = arith.mulf %75, %62 : vector<8x32xf32>
    %80 = arith.mulf %74, %78 : vector<8x32xf32>
    %81 = arith.addf %79, %80 : vector<8x32xf32>
    %82 = math.tanh %81 : vector<8x32xf32>
    %83 = arith.mulf %76, %82 : vector<8x32xf32>
    %c24 = arith.constant 24 : index
    %c0_21 = arith.constant 0 : index
    %84 = vector.load %arg8[%c24, %c0_21] : memref<64x32xf32, #tpu.memory_space<vmem>>, vector<8x32xf32>
    tpu.vector_store %arg8[%c24, %c0_21], %83 {strides = array<i32>} : memref<64x32xf32, #tpu.memory_space<vmem>>, vector<8x32xf32>,
    %85 = vector.extract_strided_slice %5 {offsets = [32, 0], sizes = [8, 128], strides = [1, 1]} : vector<64x128xf32> to vector<8x128xf32>
    %cst_22 = arith.constant dense<0.000000e+00> : vector<8x128xf32>
    %86 = tpu.matmul %83, %6, %cst_22 {dimension_numbers = #tpu.dot_dimension_numbers<[1], [0], [0], [1], [0, 0, 1, 1], [], []>} : vector<8x32xf32>, vector<32x128xf32>, vector<8x128xf32> -> vector<8x128xf32>
    %87 = arith.addf %85, %86 : vector<8x128xf32>
    %88 = arith.negf %87 : vector<8x128xf32>
    %89 = math.exp %88 : vector<8x128xf32>
    %cst_23 = arith.constant 1.000000e+00 : f32
    %90 = vector.broadcast %cst_23 : f32 to vector<8x128xf32>
    %91 = arith.addf %90, %89 : vector<8x128xf32>
    %92 = arith.divf %90, %91 : vector<8x128xf32>
    %93 = vector.extract_strided_slice %92 {offsets = [0, 0], sizes = [8, 32], strides = [1, 1]} : vector<8x128xf32> to vector<8x32xf32>
    %94 = vector.extract_strided_slice %92 {offsets = [0, 32], sizes = [8, 32], strides = [1, 1]} : vector<8x128xf32> to vector<8x32xf32>
    %95 = vector.extract_strided_slice %92 {offsets = [0, 96], sizes = [8, 32], strides = [1, 1]} : vector<8x128xf32> to vector<8x32xf32>
    %96 = vector.extract_strided_slice %87 {offsets = [0, 64], sizes = [8, 32], strides = [1, 1]} : vector<8x128xf32> to vector<8x32xf32>
    %97 = math.tanh %96 : vector<8x32xf32>
    %98 = arith.mulf %94, %81 : vector<8x32xf32>
    %99 = arith.mulf %93, %97 : vector<8x32xf32>
    %100 = arith.addf %98, %99 : vector<8x32xf32>
    %101 = math.tanh %100 : vector<8x32xf32>
    %102 = arith.mulf %95, %101 : vector<8x32xf32>
    %c32 = arith.constant 32 : index
    %c0_24 = arith.constant 0 : index
    %103 = vector.load %arg8[%c32, %c0_24] : memref<64x32xf32, #tpu.memory_space<vmem>>, vector<8x32xf32>
    tpu.vector_store %arg8[%c32, %c0_24], %102 {strides = array<i32>} : memref<64x32xf32, #tpu.memory_space<vmem>>, vector<8x32xf32>,
    %104 = vector.extract_strided_slice %5 {offsets = [40, 0], sizes = [8, 128], strides = [1, 1]} : vector<64x128xf32> to vector<8x128xf32>
    %cst_25 = arith.constant dense<0.000000e+00> : vector<8x128xf32>
    %105 = tpu.matmul %102, %6, %cst_25 {dimension_numbers = #tpu.dot_dimension_numbers<[1], [0], [0], [1], [0, 0, 1, 1], [], []>} : vector<8x32xf32>, vector<32x128xf32>, vector<8x128xf32> -> vector<8x128xf32>
    %106 = arith.addf %104, %105 : vector<8x128xf32>
    %107 = arith.negf %106 : vector<8x128xf32>
    %108 = math.exp %107 : vector<8x128xf32>
    %cst_26 = arith.constant 1.000000e+00 : f32
    %109 = vector.broadcast %cst_26 : f32 to vector<8x128xf32>
    %110 = arith.addf %109, %108 : vector<8x128xf32>
    %111 = arith.divf %109, %110 : vector<8x128xf32>
    %112 = vector.extract_strided_slice %111 {offsets = [0, 0], sizes = [8, 32], strides = [1, 1]} : vector<8x128xf32> to vector<8x32xf32>
    %113 = vector.extract_strided_slice %111 {offsets = [0, 32], sizes = [8, 32], strides = [1, 1]} : vector<8x128xf32> to vector<8x32xf32>
    %114 = vector.extract_strided_slice %111 {offsets = [0, 96], sizes = [8, 32], strides = [1, 1]} : vector<8x128xf32> to vector<8x32xf32>
    %115 = vector.extract_strided_slice %106 {offsets = [0, 64], sizes = [8, 32], strides = [1, 1]} : vector<8x128xf32> to vector<8x32xf32>
    %116 = math.tanh %115 : vector<8x32xf32>
    %117 = arith.mulf %113, %100 : vector<8x32xf32>
    %118 = arith.mulf %112, %116 : vector<8x32xf32>
    %119 = arith.addf %117, %118 : vector<8x32xf32>
    %120 = math.tanh %119 : vector<8x32xf32>
    %121 = arith.mulf %114, %120 : vector<8x32xf32>
    %c40 = arith.constant 40 : index
    %c0_27 = arith.constant 0 : index
    %122 = vector.load %arg8[%c40, %c0_27] : memref<64x32xf32, #tpu.memory_space<vmem>>, vector<8x32xf32>
    tpu.vector_store %arg8[%c40, %c0_27], %121 {strides = array<i32>} : memref<64x32xf32, #tpu.memory_space<vmem>>, vector<8x32xf32>,
    %123 = vector.extract_strided_slice %5 {offsets = [48, 0], sizes = [8, 128], strides = [1, 1]} : vector<64x128xf32> to vector<8x128xf32>
    %cst_28 = arith.constant dense<0.000000e+00> : vector<8x128xf32>
    %124 = tpu.matmul %121, %6, %cst_28 {dimension_numbers = #tpu.dot_dimension_numbers<[1], [0], [0], [1], [0, 0, 1, 1], [], []>} : vector<8x32xf32>, vector<32x128xf32>, vector<8x128xf32> -> vector<8x128xf32>
    %125 = arith.addf %123, %124 : vector<8x128xf32>
    %126 = arith.negf %125 : vector<8x128xf32>
    %127 = math.exp %126 : vector<8x128xf32>
    %cst_29 = arith.constant 1.000000e+00 : f32
    %128 = vector.broadcast %cst_29 : f32 to vector<8x128xf32>
    %129 = arith.addf %128, %127 : vector<8x128xf32>
    %130 = arith.divf %128, %129 : vector<8x128xf32>
    %131 = vector.extract_strided_slice %130 {offsets = [0, 0], sizes = [8, 32], strides = [1, 1]} : vector<8x128xf32> to vector<8x32xf32>
    %132 = vector.extract_strided_slice %130 {offsets = [0, 32], sizes = [8, 32], strides = [1, 1]} : vector<8x128xf32> to vector<8x32xf32>
    %133 = vector.extract_strided_slice %130 {offsets = [0, 96], sizes = [8, 32], strides = [1, 1]} : vector<8x128xf32> to vector<8x32xf32>
    %134 = vector.extract_strided_slice %125 {offsets = [0, 64], sizes = [8, 32], strides = [1, 1]} : vector<8x128xf32> to vector<8x32xf32>
    %135 = math.tanh %134 : vector<8x32xf32>
    %136 = arith.mulf %132, %119 : vector<8x32xf32>
    %137 = arith.mulf %131, %135 : vector<8x32xf32>
    %138 = arith.addf %136, %137 : vector<8x32xf32>
    %139 = math.tanh %138 : vector<8x32xf32>
    %140 = arith.mulf %133, %139 : vector<8x32xf32>
    %c48 = arith.constant 48 : index
    %c0_30 = arith.constant 0 : index
    %141 = vector.load %arg8[%c48, %c0_30] : memref<64x32xf32, #tpu.memory_space<vmem>>, vector<8x32xf32>
    tpu.vector_store %arg8[%c48, %c0_30], %140 {strides = array<i32>} : memref<64x32xf32, #tpu.memory_space<vmem>>, vector<8x32xf32>,
    %142 = vector.extract_strided_slice %5 {offsets = [56, 0], sizes = [8, 128], strides = [1, 1]} : vector<64x128xf32> to vector<8x128xf32>
    %cst_31 = arith.constant dense<0.000000e+00> : vector<8x128xf32>
    %143 = tpu.matmul %140, %6, %cst_31 {dimension_numbers = #tpu.dot_dimension_numbers<[1], [0], [0], [1], [0, 0, 1, 1], [], []>} : vector<8x32xf32>, vector<32x128xf32>, vector<8x128xf32> -> vector<8x128xf32>
    %144 = arith.addf %142, %143 : vector<8x128xf32>
    %145 = arith.negf %144 : vector<8x128xf32>
    %146 = math.exp %145 : vector<8x128xf32>
    %cst_32 = arith.constant 1.000000e+00 : f32
    %147 = vector.broadcast %cst_32 : f32 to vector<8x128xf32>
    %148 = arith.addf %147, %146 : vector<8x128xf32>
    %149 = arith.divf %147, %148 : vector<8x128xf32>
    %150 = vector.extract_strided_slice %149 {offsets = [0, 0], sizes = [8, 32], strides = [1, 1]} : vector<8x128xf32> to vector<8x32xf32>
    %151 = vector.extract_strided_slice %149 {offsets = [0, 32], sizes = [8, 32], strides = [1, 1]} : vector<8x128xf32> to vector<8x32xf32>
    %152 = vector.extract_strided_slice %149 {offsets = [0, 96], sizes = [8, 32], strides = [1, 1]} : vector<8x128xf32> to vector<8x32xf32>
    %153 = vector.extract_strided_slice %144 {offsets = [0, 64], sizes = [8, 32], strides = [1, 1]} : vector<8x128xf32> to vector<8x32xf32>
    %154 = math.tanh %153 : vector<8x32xf32>
    %155 = arith.mulf %151, %138 : vector<8x32xf32>
    %156 = arith.mulf %150, %154 : vector<8x32xf32>
    %157 = arith.addf %155, %156 : vector<8x32xf32>
    %158 = math.tanh %157 : vector<8x32xf32>
    %159 = arith.mulf %152, %158 : vector<8x32xf32>
    %c56 = arith.constant 56 : index
    %c0_33 = arith.constant 0 : index
    %160 = vector.load %arg8[%c56, %c0_33] : memref<64x32xf32, #tpu.memory_space<vmem>>, vector<8x32xf32>
    tpu.vector_store %arg8[%c56, %c0_33], %159 {strides = array<i32>} : memref<64x32xf32, #tpu.memory_space<vmem>>, vector<8x32xf32>,
    %c0_34 = arith.constant 0 : index
    %c0_35 = arith.constant 0 : index
    %161 = vector.load %arg8[%c0_34, %c0_35] : memref<64x32xf32, #tpu.memory_space<vmem>>, vector<64x32xf32>
    %c0_36 = arith.constant 0 : index
    %c0_37 = arith.constant 0 : index
    %162 = vector.load %arg5[%c0_36, %c0_37] : memref<32x128xf32, #tpu.memory_space<vmem>>, vector<32x128xf32>
    %cst_38 = arith.constant dense<0.000000e+00> : vector<64x128xf32>
    %163 = tpu.matmul %161, %162, %cst_38 {dimension_numbers = #tpu.dot_dimension_numbers<[1], [0], [0], [1], [0, 0, 1, 1], [], []>} : vector<64x32xf32>, vector<32x128xf32>, vector<64x128xf32> -> vector<64x128xf32>
    %c0_39 = arith.constant 0 : index
    %c0_40 = arith.constant 0 : index
    %164 = vector.load %arg6[%c0_39, %c0_40] : memref<1x128xf32, #tpu.memory_space<vmem>>, vector<1x128xf32>
    %165 = vector.broadcast %164 : vector<1x128xf32> to vector<64x128xf32>
    %166 = arith.addf %163, %165 : vector<64x128xf32>
    %c0_41 = arith.constant 0 : index
    %c0_42 = arith.constant 0 : index
    %167 = vector.load %arg7[%c0_41, %c0_42] : memref<64x128xf32, #tpu.memory_space<vmem>>, vector<64x128xf32>
    tpu.vector_store %arg7[%c0_41, %c0_42], %166 {strides = array<i32>} : memref<64x128xf32, #tpu.memory_space<vmem>>, vector<64x128xf32>,
    return
  }
}

</mosaic_0001>

<bundles_post_ra>
// kernel: tpu_custom_call.1
= control target key start
LH: loop header
LB: loop body
LE: loop exit
PB: predicated region body
PF: predicated region fallthrough
CT: control target
= control target key end

     0   :  { %vm44_vm0 = vcmask 64512   ;;  %v1479_v5 = vmov 0.0   ;;  %s1774_s0 = inlined_call_operand.<no memory space> [shape: s32[1], index: 0, kind: input, shape index: {}]   ;;  %s1775_s1 = inlined_call_operand.vmem [shape: f32[64,8], index: 1, kind: input, shape index: {}]   ;;  %s1776_s2 = inlined_call_operand.vmem [shape: f32[8,128], index: 2, kind: input, shape index: {}]   ;;  %s1777_s3 = inlined_call_operand.vmem [shape: f32[1,128], index: 3, kind: input, shape index: {}]   ;;  %s1778_s4 = inlined_call_operand.vmem [shape: f32[32,128], index: 4, kind: input, shape index: {}]   ;;  %s1779_s5 = inlined_call_operand.vmem [shape: f32[32,128], index: 5, kind: input, shape index: {}]   ;;  %s1780_s6 = inlined_call_operand.vmem [shape: f32[1,128], index: 6, kind: input, shape index: {}]   ;;  %s1781_s7 = inlined_call_operand.hbm [shape: f32[64,128], index: 7, kind: output, shape index: {}]  }
   0x1   :  { %v36_v0 = vld [vmem:[%s1776_s2] sm:$0xff]  ;;  %v33_v2 = vld [vmem:[%s1775_s1 + $0x28] sm:$0xff]  ;;  %v1539_v3 = vld [vmem:[%s1778_s4 + $0x18] sm:$0xff] }
   0x2   :  { %v32_v1 = vld [vmem:[%s1775_s1 + $0x20] sm:$0xff]  ;;  %1384 = vmatprep.subr.mxu1 %v36_v0  ;;  %1262 = vmatprep.subr.mxu0 %v36_v0  ;;  %v29_v6 = vld [vmem:[%s1775_s1 + $0x8] sm:$0xff]  ;;  %v34_v7 = vld [vmem:[%s1775_s1 + $0x30] sm:$0xff] }
   0x3   :  { %1270 = vmatprep.mubr.msk.f32.mxu1 %vm44_vm0, %v32_v1  ;;  %1385 = vmatpush3.msra.mxu1 %v36_v0  ;;  %v28_v4 = vld [vmem:[%s1775_s1] sm:$0xff]  ;;  %v1556_v8 = vld [vmem:[%s1778_s4 + $0x10] sm:$0xff] }
   0x4   :  { %1271 = vmatmul.mubr.msk.f32.vlgmr.msra.gmra.mxu1 %vm44_vm0, %v33_v2  ;;  %1276 = vmatprep.subr.mxu1 %v1479_v5 }
   0x5   :  { %1277 = vmatpush3.msra.mxu1 %v1539_v3  ;;  %1263 = vmatpush3.msra.mxu0 %v36_v0 }
   0x6   :  { %13 = vsyncpa [#allocation5], 0  ;;  %1264 = vmatprep.mubr.msk.f32.mxu0 %vm44_vm0, %v28_v4  ;;  %1278 = vmatprep.subr.mxu1 %v1479_v5  ;;  %v35_v9 = vld [vmem:[%s1775_s1 + $0x38] sm:$0xff]  ;;  %v1568_v10 = vld [vmem:[%s1778_s4 + $0x8] sm:$0xff]  ;;  %vm1480_vm1 = vmmov 0   ;;  %s1481_s22 = smov 64  }
   0x7   :  { %1265 = vmatmul.mubr.msk.f32.vlgmr.msra.gmra.mxu0 %vm44_vm0, %v29_v6  ;;  %1273 = vmatprep.mubr.msk.f32.mxu1 %vm44_vm0, %v34_v7  ;;  %v1577_v11 = vld [vmem:[%s1778_s4] sm:$0xff]  ;;  %vm178_vm2 = vcmask 261120   ;;  %v30_v51 = vld [vmem:[%s1775_s1 + $0x10] sm:$0xff]  ;;  %v31_v52 = vld [vmem:[%s1775_s1 + $0x18] sm:$0xff] }
   0x8   :  { %1279 = vmatpush3.msra.mxu1 %v1556_v8  ;;  %1298 = vmatprep.subr.mxu0 %v1479_v5  ;;  %v1613_v17 = vld [vmem:[%s1777_s3] ss:$0 sm:$0xff]  ;;  %s1482_s3 = smov 32  }
   0x9   :  { %1274 = vmatmul.mubr.msk.f32.gmra.mxu1 %vm44_vm0, %v35_v9  ;;  %1280 = vmatprep.subr.mxu1 %v1479_v5 }
   0xa   :  { %1281 = vmatpush3.msra.mxu1 %v1568_v10  ;;  %1284 = vmatprep.mubr.msk.f32.mxu1 %vm1480_vm1, %v1479_v5 }
   0xb   :  { %1282 = vmatprep.subr.mxu1 %v1479_v5  ;;  %1299 = vmatpush3.msra.mxu0 %v1539_v3 }
   0xc   :  { %1283 = vmatpush3.msra.mxu1 %v1577_v11  ;;  %1300 = vmatprep.subr.mxu0 %v1479_v5 }
   0xd   :  { %1285 = vmatmul.mubr.f32.vlgmr.msra.gmra.mxu1 %v1479_v5  ;;  %1287 = vmatprep.subr.mxu1 %v1479_v5 }
   0xe   :  { %1288 = vmatpush3.msra.mxu1 %v1539_v3  ;;  %1295 = vmatprep.mubr.msk.f32.mxu1 %vm1480_vm1, %v1479_v5 }
   0xf   :  { %1289 = vmatprep.subr.mxu1 %v1479_v5  ;;  %1301 = vmatpush3.msra.mxu0 %v1556_v8 }
  0x10   :  { %1290 = vmatpush3.msra.mxu1 %v1556_v8  ;;  %1302 = vmatprep.subr.mxu0 %v1479_v5 }
  0x11   :  { %1291 = vmatprep.subr.mxu1 %v1479_v5  ;;  %1303 = vmatpush3.msra.mxu0 %v1568_v10 }
  0x12   :  { %1292 = vmatpush3.msra.mxu1 %v1568_v10  ;;  %1304 = vmatprep.subr.mxu0 %v1479_v5 }
  0x13   :  { %1293 = vmatprep.subr.mxu1 %v1479_v5  ;;  %1305 = vmatpush3.msra.mxu0 %v1577_v11 }
  0x14   :  { %1294 = vmatpush3.msra.mxu1 %v1577_v11  ;;  %1320 = vmatprep.subr.mxu0 %v1479_v5 }
  0x15   :  { %1309 = vmatprep.subr.mxu1 %v1479_v5  ;;  %1267 = vmatprep.mubr.msk.f32.mxu0 %vm44_vm0, %v30_v51 }
  0x16   :  { %1268 = vmatmul.mubr.msk.f32.gmra.mxu0 %vm44_vm0, %v31_v52 }
  0x17   :  { %1306 = vmatprep.mubr.msk.f32.mxu0 %vm1480_vm1, %v1479_v5 }
  0xc4   :  { %v1604_v12 = vpop.f32.mrf.mxu1 }
  0xc6   :  { %v1606_v13 = vpop.f32.mrf.mxu1 }
  0xc7   :  { %v1266_v14 = vpop.f32.mrf.mxu0 }
  0xc8   :  { %v141_v37 = vadd.f32 %v1266_v14, %v1613_v17 }
  0xc9   :  { %v1608_v15 = vpop.f32.mrf.mxu1  ;;  %v135_v16 = vpop.f32.mrf.mxu0 }
  0xca   :  { %v136_v19 = vadd.f32 %v1613_v17, %v135_v16 }
  0xcb   :  { %v1615_v18 = vpop.f32.mrf.mxu1 }
  0xcd   :  { %v248_v20 = vpop.f32.mrf.mxu1 }
  0xce   :  { %v252_v21 = vadd.f32 %v248_v20, %v136_v19 }
  0xcf   :  { %v1286_v22 = vpop.f32.mrf.mxu1 }
  0xd0   :  { %1393 = vtanh.f32 %v252_v21  ;;  %v1177_v24 = vmul.f32 -1.442695, %v252_v21 }
  0xd2   :  { %1395 = vpow2.f32 %v1177_v24 }
  0xd6   :  { %v1269_v57 = vpop.f32.mrf.mxu0 }
  0xd8   :  { %v145_v58 = vpop.f32.mrf.mxu0 }
  0xd9   :  { %v146_v59 = vadd.f32 %v1613_v17, %v145_v58  ;;  %v161_v58 = vadd.f32 %v1604_v12, %v1613_v17 }
  0xdd   :  { %v1394_v23 = vpop.eup %1393 }
  0xde   :  { %262 = vrot.lane.b32.xlu0 %v1394_v23, %s1481_s22  ;;  %v151_v23 = vadd.f32 %v1269_v57, %v1613_v17 }
  0xdf   :  { %v1396_v25 = vpop.eup %1395 }
  0xe0   :  { %v256_v26 = vadd.f32 1.0, %v1396_v25 }
  0xe2   :  { %1397 = vrcp.f32 %v256_v26 }
  0xef   :  { %v1398_v27 = vpop.eup %1397 }
  0xf0   :  { %v260_v30 = vmul.f32 0.0, %v1398_v27 }
 0x150   :  { %v263_v28 = vpop.permute.xlu0 %262 }
 0x151   :  { %v265_v29 = vmul.f32 %v1398_v27, %v263_v28 }
 0x153   :  { %267 = vrot.lane.b32.xlu0 %v265_v29, %s1482_s3 }
 0x1c5   :  { %v268_v31 = vpop.permute.xlu0 %267 }
 0x1c6   :  { %v270_v32 = vadd.f32 %v268_v31, %v260_v30 }
 0x1c8   :  { %1399 = vtanh.f32 %v270_v32 }
 0x1d5   :  { %v1400_v33 = vpop.eup %1399 }
 0x1d6   :  { %273 = vrot.lane.b32.xlu1 %v1400_v33, %s1481_s22 }
 0x248   :  { %v274_v34 = vpop.permute.xlu1 %273 }
 0x249   :  { %v276_v35 = vmul.f32 %v1398_v27, %v274_v34 }
 0x24b   :  { %278 = vrot.lane.b32.xlu1 %v276_v35, %s1482_s3 }
 0x2bd   :  { %v279_v36 = vpop.permute.xlu1 %278 }
 0x2be   :  { %281 = vst.msk [vmem:[#allocation2] sm:$0xff] %vm178_vm2, %v279_v36  ;;  %1296 = vmatmul.mubr.msk.f32.vlgmr.msra.gmra.mxu1 %vm178_vm2, %v279_v36 }
 0x2bf   :  { %1310 = vmatpush3.msra.mxu1 %v1539_v3  ;;  %1317 = vmatprep.mubr.msk.f32.mxu1 %vm1480_vm1, %v1479_v5 }
 0x2c0   :  { %1311 = vmatprep.subr.mxu1 %v1479_v5 }
 0x2c1   :  { %1312 = vmatpush3.msra.mxu1 %v1556_v8 }
 0x2c2   :  { %1313 = vmatprep.subr.mxu1 %v1479_v5 }
 0x2c3   :  { %1314 = vmatpush3.msra.mxu1 %v1568_v10 }
 0x2c4   :  { %1315 = vmatprep.subr.mxu1 %v1479_v5 }
 0x2c5   :  { %1316 = vmatpush3.msra.mxu1 %v1577_v11 }
 0x2c6   :  { %1331 = vmatprep.subr.mxu1 %v1479_v5 }
 0x37e   :  { %v350_v38 = vpop.f32.mrf.mxu1 }
 0x37f   :  { %v354_v39 = vadd.f32 %v350_v38, %v141_v37 }
 0x380   :  { %v1297_v40 = vpop.f32.mrf.mxu1 }
 0x381   :  { %1401 = vtanh.f32 %v354_v39  ;;  %v1179_v42 = vmul.f32 -1.442695, %v354_v39 }
 0x383   :  { %1403 = vpow2.f32 %v1179_v42 }
 0x38e   :  { %v1402_v41 = vpop.eup %1401 }
 0x38f   :  { %364 = vrot.lane.b32.xlu0 %v1402_v41, %s1481_s22  ;;  %v156_v41 = vadd.f32 %v1613_v17, %v1606_v13 }
 0x390   :  { %v1404_v43 = vpop.eup %1403 }
 0x391   :  { %v358_v44 = vadd.f32 1.0, %v1404_v43 }
 0x393   :  { %1405 = vrcp.f32 %v358_v44 }
 0x3a0   :  { %v1406_v45 = vpop.eup %1405 }
 0x3a1   :  { %v362_v48 = vmul.f32 %v1406_v45, %v270_v32 }
 0x401   :  { %v365_v46 = vpop.permute.xlu0 %364 }
 0x402   :  { %v367_v47 = vmul.f32 %v1406_v45, %v365_v46 }
 0x404   :  { %369 = vrot.lane.b32.xlu1 %v367_v47, %s1482_s3 }
 0x476   :  { %v370_v49 = vpop.permute.xlu1 %369 }
 0x477   :  { %v372_v50 = vadd.f32 %v370_v49, %v362_v48 }
 0x479   :  { %1407 = vtanh.f32 %v372_v50 }
 0x486   :  { %v1408_v53 = vpop.eup %1407 }
 0x487   :  { %375 = vrot.lane.b32.xlu0 %v1408_v53, %s1481_s22 }
 0x4f9   :  { %v376_v54 = vpop.permute.xlu0 %375 }
 0x4fa   :  { %v378_v55 = vmul.f32 %v1406_v45, %v376_v54 }
 0x4fc   :  { %380 = vrot.lane.b32.xlu1 %v378_v55, %s1482_s3 }
 0x56e   :  { %v381_v56 = vpop.permute.xlu1 %380 }
 0x56f   :  { %383 = vst.msk [vmem:[#allocation2 + $0x8] sm:$0xff] %vm178_vm2, %v381_v56  ;;  %1307 = vmatmul.mubr.msk.f32.vlgmr.msra.gmra.mxu0 %vm178_vm2, %v381_v56 }
 0x570   :  { %1321 = vmatpush3.msra.mxu0 %v1539_v3  ;;  %1328 = vmatprep.mubr.msk.f32.mxu0 %vm1480_vm1, %v1479_v5 }
 0x571   :  { %1322 = vmatprep.subr.mxu0 %v1479_v5 }
 0x572   :  { %1323 = vmatpush3.msra.mxu0 %v1556_v8 }
 0x573   :  { %1324 = vmatprep.subr.mxu0 %v1479_v5 }
 0x574   :  { %1325 = vmatpush3.msra.mxu0 %v1568_v10 }
 0x575   :  { %1326 = vmatprep.subr.mxu0 %v1479_v5 }
 0x576   :  { %1327 = vmatpush3.msra.mxu0 %v1577_v11 }
 0x577   :  { %1342 = vmatprep.subr.mxu0 %v1479_v5 }
 0x62f   :  { %v452_v60 = vpop.f32.mrf.mxu0 }
 0x630   :  { %v456_v61 = vadd.f32 %v452_v60, %v146_v59 }
 0x631   :  { %v1308_v62 = vpop.f32.mrf.mxu0 }
 0x632   :  { %1409 = vtanh.f32 %v456_v61  ;;  %v1181_v0 = vmul.f32 -1.442695, %v456_v61 }
 0x634   :  { %1411 = vpow2.f32 %v1181_v0 }
 0x63f   :  { %v1410_v63 = vpop.eup %1409 }
 0x640   :  { %466 = vrot.lane.b32.xlu0 %v1410_v63, %s1481_s22 }
 0x641   :  { %v1412_v1 = vpop.eup %1411 }
 0x642   :  { %v460_v2 = vadd.f32 1.0, %v1412_v1 }
 0x644   :  { %1413 = vrcp.f32 %v460_v2  ;;  %v1007_v2 = vld [vmem:[%s1779_s5 + $0x18] sm:$0xff] }
 0x651   :  { %v1414_v4 = vpop.eup %1413 }
 0x652   :  { %v464_v9 = vmul.f32 %v1414_v4, %v372_v50 }
 0x6b2   :  { %v467_v6 = vpop.permute.xlu0 %466 }
 0x6b3   :  { %v469_v7 = vmul.f32 %v1414_v4, %v467_v6 }
 0x6b5   :  { %471 = vrot.lane.b32.xlu1 %v469_v7, %s1482_s3 }
 0x727   :  { %v472_v14 = vpop.permute.xlu1 %471 }
 0x728   :  { %v474_v16 = vadd.f32 %v472_v14, %v464_v9  ;;  %v1006_v14 = vld [vmem:[%s1779_s5 + $0x10] sm:$0xff] }
 0x72a   :  { %1415 = vtanh.f32 %v474_v16 }
 0x737   :  { %v1416_v19 = vpop.eup %1415 }
 0x738   :  { %477 = vrot.lane.b32.xlu0 %v1416_v19, %s1481_s22  ;;  %v1005_v19 = vld [vmem:[%s1779_s5 + $0x8] sm:$0xff] }
 0x7aa   :  { %v478_v20 = vpop.permute.xlu0 %477 }
 0x7ab   :  { %v480_v21 = vmul.f32 %v1414_v4, %v478_v20  ;;  %v1004_v20 = vld [vmem:[%s1779_s5] sm:$0xff] }
 0x7ad   :  { %482 = vrot.lane.b32.xlu1 %v480_v21, %s1482_s3  ;;  %v997_v21 = vld [vmem:[#allocation2 + $0x8] sm:$0xff] }
 0x81f   :  { %v483_v22 = vpop.permute.xlu1 %482 }
 0x820   :  { %485 = vst.msk [vmem:[#allocation2 + $0x10] sm:$0xff] %vm178_vm2, %v483_v22  ;;  %1318 = vmatmul.mubr.msk.f32.vlgmr.msra.gmra.mxu1 %vm178_vm2, %v483_v22 }
 0x821   :  { %1332 = vmatpush3.msra.mxu1 %v1539_v3  ;;  %1339 = vmatprep.mubr.msk.f32.mxu1 %vm1480_vm1, %v1479_v5 }
 0x822   :  { %1333 = vmatprep.subr.mxu1 %v1479_v5 }
 0x823   :  { %1334 = vmatpush3.msra.mxu1 %v1556_v8 }
 0x824   :  { %1335 = vmatprep.subr.mxu1 %v1479_v5 }
 0x825   :  { %1336 = vmatpush3.msra.mxu1 %v1568_v10 }
 0x826   :  { %1337 = vmatprep.subr.mxu1 %v1479_v5 }
 0x827   :  { %1338 = vmatpush3.msra.mxu1 %v1577_v11  ;;  %v998_v22 = vld [vmem:[#allocation2 + $0x10] sm:$0xff] }
 0x828   :  { %1353 = vmatprep.subr.mxu1 %v1479_v5 }
 0x8e0   :  { %v554_v24 = vpop.f32.mrf.mxu1 }
 0x8e1   :  { %v558_v25 = vadd.f32 %v554_v24, %v151_v23 }
 0x8e2   :  { %v1319_v26 = vpop.f32.mrf.mxu1 }
 0x8e3   :  { %1417 = vtanh.f32 %v558_v25  ;;  %v1183_v28 = vmul.f32 -1.442695, %v558_v25  ;;  %v166_v26 = vadd.f32 %v1613_v17, %v1615_v18 }
 0x8e5   :  { %1419 = vpow2.f32 %v1183_v28 }
 0x8f0   :  { %v1418_v27 = vpop.eup %1417 }
 0x8f1   :  { %568 = vrot.lane.b32.xlu0 %v1418_v27, %s1481_s22 }
 0x8f2   :  { %v1420_v29 = vpop.eup %1419 }
 0x8f3   :  { %v562_v30 = vadd.f32 1.0, %v1420_v29 }
 0x8f5   :  { %1421 = vrcp.f32 %v562_v30  ;;  %v1745_v30 = vld [vmem:[%s1780_s6] ss:$0 sm:$0xff]  ;;  %s1483_s6 = smov [#allocation4]  }
 0x8f6   :  { %s1157_s10 = sshll.u32 %s1483_s6, 4  ;;  %s1158_s10 = int_to_ptr.vmem [resolvable:$true] %s1157_s10 }
 0x8f7   :  { %s1457_s11 = scalar_lea.vmem %s1158_s10, 1024  ;;  %p1462_p1 = scmp.lt.s32.totalorder %s1158_s10, %s1158_s10 }
 0x8f8   :  { %p1458_p0 = scmp.ne.s32.totalorder %s1158_s10, %s1457_s11  ;;  %p1463_p2 = scmp.lt.s32.totalorder %s1457_s11, %s1457_s11 }
 0x8fa   :  { %p1464_p3 = por %p1463_p2, %p1462_p1 }
 0x8fc   :  { %p1465_p4 = pnand %p1464_p3, %p1458_p0 }
 0x902   :  { %v1422_v31 = vpop.eup %1421 }
 0x903   :  { %v566_v34 = vmul.f32 %v1422_v31, %v474_v16  ;;  %v996_v16 = vld [vmem:[#allocation2] sm:$0xff] }
 0x963   :  { %v569_v32 = vpop.permute.xlu0 %568 }
 0x964   :  { %v571_v33 = vmul.f32 %v1422_v31, %v569_v32 }
 0x966   :  { %573 = vrot.lane.b32.xlu1 %v571_v33, %s1482_s3 }
 0x9d8   :  { %v574_v35 = vpop.permute.xlu1 %573 }
 0x9d9   :  { %v576_v36 = vadd.f32 %v574_v35, %v566_v34 }
 0x9db   :  { %1423 = vtanh.f32 %v576_v36 }
 0x9e8   :  { %v1424_v37 = vpop.eup %1423 }
 0x9e9   :  { %579 = vrot.lane.b32.xlu0 %v1424_v37, %s1481_s22 }
 0xa5b   :  { %v580_v38 = vpop.permute.xlu0 %579 }
 0xa5c   :  { %v582_v39 = vmul.f32 %v1422_v31, %v580_v38 }
 0xa5e   :  { %584 = vrot.lane.b32.xlu1 %v582_v39, %s1482_s3 }
 0xad0   :  { %v585_v40 = vpop.permute.xlu1 %584 }
 0xad1   :  { %587 = vst.msk [vmem:[#allocation2 + $0x18] sm:$0xff] %vm178_vm2, %v585_v40  ;;  %1329 = vmatmul.mubr.msk.f32.vlgmr.msra.gmra.mxu0 %vm178_vm2, %v585_v40 }
 0xad2   :  { %1343 = vmatpush3.msra.mxu0 %v1539_v3  ;;  %1350 = vmatprep.mubr.msk.f32.mxu0 %vm1480_vm1, %v1479_v5 }
 0xad3   :  { %1344 = vmatprep.subr.mxu0 %v1479_v5 }
 0xad4   :  { %1345 = vmatpush3.msra.mxu0 %v1556_v8 }
 0xad5   :  { %1346 = vmatprep.subr.mxu0 %v1479_v5 }
 0xad6   :  { %1347 = vmatpush3.msra.mxu0 %v1568_v10 }
 0xad7   :  { %1348 = vmatprep.subr.mxu0 %v1479_v5 }
 0xad8   :  { %1349 = vmatpush3.msra.mxu0 %v1577_v11  ;;  %v999_v23 = vld [vmem:[#allocation2 + $0x18] sm:$0xff] }
 0xad9   :  { %1364 = vmatprep.subr.mxu0 %v1007_v2 }
 0xb91   :  { %v656_v42 = vpop.f32.mrf.mxu0 }
 0xb92   :  { %v660_v43 = vadd.f32 %v656_v42, %v156_v41 }
 0xb93   :  { %v1330_v44 = vpop.f32.mrf.mxu0 }
 0xb94   :  { %1425 = vtanh.f32 %v660_v43  ;;  %v1185_v46 = vmul.f32 -1.442695, %v660_v43 }
 0xb96   :  { %1427 = vpow2.f32 %v1185_v46 }
 0xba1   :  { %v1426_v45 = vpop.eup %1425 }
 0xba2   :  { %670 = vrot.lane.b32.xlu0 %v1426_v45, %s1481_s22 }
 0xba3   :  { %v1428_v47 = vpop.eup %1427 }
 0xba4   :  { %v664_v48 = vadd.f32 1.0, %v1428_v47 }
 0xba6   :  { %1429 = vrcp.f32 %v664_v48 }
 0xbb3   :  { %v1430_v49 = vpop.eup %1429 }
 0xbb4   :  { %v668_v52 = vmul.f32 %v1430_v49, %v576_v36 }
 0xc14   :  { %v671_v50 = vpop.permute.xlu0 %670 }
 0xc15   :  { %v673_v51 = vmul.f32 %v1430_v49, %v671_v50 }
 0xc17   :  { %675 = vrot.lane.b32.xlu1 %v673_v51, %s1482_s3 }
 0xc89   :  { %v676_v53 = vpop.permute.xlu1 %675 }
 0xc8a   :  { %v678_v13 = vadd.f32 %v676_v53, %v668_v52 }
 0xc8c   :  { %1431 = vtanh.f32 %v678_v13 }
 0xc99   :  { %v1432_v54 = vpop.eup %1431 }
 0xc9a   :  { %681 = vrot.lane.b32.xlu0 %v1432_v54, %s1481_s22 }
 0xd0c   :  { %v682_v55 = vpop.permute.xlu0 %681 }
 0xd0d   :  { %v684_v56 = vmul.f32 %v1430_v49, %v682_v55 }
 0xd0f   :  { %686 = vrot.lane.b32.xlu1 %v684_v56, %s1482_s3  ;;  %v171_v56 = vadd.f32 %v1608_v15, %v1613_v17 }
 0xd81   :  { %v687_v57 = vpop.permute.xlu1 %686 }
 0xd82   :  { %689 = vst.msk [vmem:[#allocation2 + $0x20] sm:$0xff] %vm178_vm2, %v687_v57  ;;  %1340 = vmatmul.mubr.msk.f32.vlgmr.msra.gmra.mxu1 %vm178_vm2, %v687_v57 }
 0xd83   :  { %1354 = vmatpush3.msra.mxu1 %v1539_v3  ;;  %1361 = vmatprep.mubr.msk.f32.mxu1 %vm1480_vm1, %v1479_v5 }
 0xd84   :  { %1355 = vmatprep.subr.mxu1 %v1479_v5 }
 0xd85   :  { %1356 = vmatpush3.msra.mxu1 %v1556_v8 }
 0xd86   :  { %1357 = vmatprep.subr.mxu1 %v1479_v5 }
 0xd87   :  { %1358 = vmatpush3.msra.mxu1 %v1568_v10 }
 0xd88   :  { %1359 = vmatprep.subr.mxu1 %v1479_v5 }
 0xd89   :  { %1360 = vmatpush3.msra.mxu1 %v1577_v11  ;;  %v1000_v24 = vld [vmem:[#allocation2 + $0x20] sm:$0xff] }
 0xe42   :  { %v758_v59 = vpop.f32.mrf.mxu1 }
 0xe43   :  { %v762_v3 = vadd.f32 %v758_v59, %v161_v58 }
 0xe44   :  { %v1341_v60 = vpop.f32.mrf.mxu1 }
 0xe45   :  { %1433 = vtanh.f32 %v762_v3  ;;  %v1187_v62 = vmul.f32 -1.442695, %v762_v3 }
 0xe47   :  { %1435 = vpow2.f32 %v1187_v62 }
 0xe52   :  { %v1434_v61 = vpop.eup %1433 }
 0xe53   :  { %772 = vrot.lane.b32.xlu0 %v1434_v61, %s1481_s22 }
 0xe54   :  { %v1436_v8 = vpop.eup %1435 }
 0xe55   :  { %v766_v63 = vadd.f32 1.0, %v1436_v8 }
 0xe57   :  { %1437 = vrcp.f32 %v766_v63 }
 0xe64   :  { %v1438_v10 = vpop.eup %1437 }
 0xe65   :  { %v770_v11 = vmul.f32 %v1438_v10, %v678_v13 }
 0xec5   :  { %v773_v0 = vpop.permute.xlu0 %772 }
 0xec6   :  { %v775_v5 = vmul.f32 %v1438_v10, %v773_v0 }
 0xec8   :  { %777 = vrot.lane.b32.xlu1 %v775_v5, %s1482_s3 }
 0xf3a   :  { %v778_v1 = vpop.permute.xlu1 %777 }
 0xf3b   :  { %v1715_v12 = vadd.f32 %v778_v1, %v770_v11 }
 0xf3d   :  { %1439 = vtanh.f32 %v1715_v12 }
 0xf4a   :  { %v1440_v4 = vpop.eup %1439 }
 0xf4b   :  { %783 = vrot.lane.b32.xlu0 %v1440_v4, %s1481_s22 }
 0xfbd   :  { %v784_v6 = vpop.permute.xlu0 %783 }
 0xfbe   :  { %v786_v7 = vmul.f32 %v1438_v10, %v784_v6 }
 0xfc0   :  { %788 = vrot.lane.b32.xlu1 %v786_v7, %s1482_s3 }
0x1032   :  { %v789_v9 = vpop.permute.xlu1 %788 }
0x1033   :  { %791 = vst.msk [vmem:[#allocation2 + $0x28] sm:$0xff] %vm178_vm2, %v789_v9  ;;  %1351 = vmatmul.mubr.msk.f32.vlgmr.msra.gmra.mxu0 %vm178_vm2, %v789_v9 }
0x1034   :  { %1365 = vmatpush3.msra.mxu0 %v1007_v2  ;;  %1372 = vmatprep.mubr.msk.f32.mxu0 %vm178_vm2, %v996_v16 }
0x1035   :  { %1366 = vmatprep.subr.mxu0 %v1006_v14 }
0x1036   :  { %1367 = vmatpush3.msra.mxu0 %v1006_v14 }
0x1037   :  { %1368 = vmatprep.subr.mxu0 %v1005_v19 }
0x1038   :  { %1369 = vmatpush3.msra.mxu0 %v1005_v19 }
0x1039   :  { %1370 = vmatprep.subr.mxu0 %v1004_v20 }
0x103a   :  { %1371 = vmatpush3.msra.mxu0 %v1004_v20  ;;  %v1001_v25 = vld [vmem:[#allocation2 + $0x28] sm:$0xff] }
0x103b   :  { %1373 = vmatmul.mubr.msk.f32.vlgmr.msra.gmra.mxu0 %vm178_vm2, %v997_v21 }
0x103c   :  { %1375 = vmatprep.mubr.msk.f32.mxu0 %vm178_vm2, %v998_v22 }
0x103f   :  { %1376 = vmatmul.mubr.msk.f32.gmra.mxu0 %vm178_vm2, %v999_v23 }
0x1040   :  { %1378 = vmatprep.mubr.msk.f32.mxu0 %vm178_vm2, %v1000_v24 }
0x1043   :  { %1379 = vmatmul.mubr.msk.f32.gmra.mxu0 %vm178_vm2, %v1001_v25 }
0x10f3   :  { %v860_v27 = vpop.f32.mrf.mxu0 }
0x10f4   :  { %v864_v28 = vadd.f32 %v860_v27, %v166_v26 }
0x10f5   :  { %v1352_v29 = vpop.f32.mrf.mxu0 }
0x10f6   :  { %1441 = vtanh.f32 %v864_v28  ;;  %v1189_v43 = vmul.f32 -1.442695, %v864_v28 }
0x10f8   :  { %1443 = vpow2.f32 %v1189_v43 }
0x10fb   :  { %v1374_v31 = vpop.f32.mrf.mxu0 }
0x10fc   :  { %v1111_v32 = vadd.f32 %v1374_v31, %v1745_v30 }
0x10fd   :  { %v1105_v33 = vpop.f32.mrf.mxu0 }
0x10fe   :  { %1145 = vst [vmem:[#allocation4 + $0x8] sm:$0xff] %v1111_v32  ;;  %v1106_v34 = vadd.f32 %v1745_v30, %v1105_v33 }
0x10ff   :  { %v1377_v35 = vpop.f32.mrf.mxu0 }
0x1100   :  { %1144 = vst [vmem:[#allocation4] sm:$0xff] %v1106_v34  ;;  %v1121_v18 = vadd.f32 %v1377_v35, %v1745_v30 }
0x1101   :  { %v1115_v36 = vpop.f32.mrf.mxu0 }
0x1102   :  { %1147 = vst [vmem:[#allocation4 + $0x18] sm:$0xff] %v1121_v18  ;;  %v1116_v37 = vadd.f32 %v1745_v30, %v1115_v36 }
0x1103   :  { %v1442_v38 = vpop.eup %1441  ;;  %v1380_v39 = vpop.f32.mrf.mxu0 }
0x1104   :  { %1146 = vst [vmem:[#allocation4 + $0x10] sm:$0xff] %v1116_v37  ;;  %v1131_v40 = vadd.f32 %v1380_v39, %v1745_v30  ;;  %874 = vrot.lane.b32.xlu0 %v1442_v38, %s1481_s22 }
0x1105   :  { %v1125_v41 = vpop.f32.mrf.mxu0  ;;  %v1444_v44 = vpop.eup %1443 }
0x1106   :  { %1149 = vst [vmem:[#allocation4 + $0x28] sm:$0xff] %v1131_v40  ;;  %v1126_v42 = vadd.f32 %v1745_v30, %v1125_v41  ;;  %v868_v45 = vadd.f32 1.0, %v1444_v44 }
0x1108   :  { %1148 = vst [vmem:[#allocation4 + $0x20] sm:$0xff] %v1126_v42  ;;  %1445 = vrcp.f32 %v868_v45 }
0x1115   :  { %v1446_v46 = vpop.eup %1445 }
0x1116   :  { %v872_v49 = vmul.f32 %v1446_v46, %v1715_v12 }
0x1176   :  { %v875_v47 = vpop.permute.xlu0 %874 }
0x1177   :  { %v877_v48 = vmul.f32 %v1446_v46, %v875_v47 }
0x1179   :  { %879 = vrot.lane.b32.xlu1 %v877_v48, %s1482_s3 }
0x11eb   :  { %v880_v50 = vpop.permute.xlu1 %879 }
0x11ec   :  { %v882_v51 = vadd.f32 %v880_v50, %v872_v49 }
0x11ee   :  { %1447 = vtanh.f32 %v882_v51 }
0x11fb   :  { %v1448_v52 = vpop.eup %1447 }
0x11fc   :  { %885 = vrot.lane.b32.xlu0 %v1448_v52, %s1481_s22 }
0x126e   :  { %v886_v53 = vpop.permute.xlu0 %885 }
0x126f   :  { %v888_v13 = vmul.f32 %v1446_v46, %v886_v53 }
0x1271   :  { %890 = vrot.lane.b32.xlu1 %v888_v13, %s1482_s3 }
0x12e3   :  { %v891_v54 = vpop.permute.xlu1 %890 }
0x12e4   :  { %893 = vst.msk [vmem:[#allocation2 + $0x30] sm:$0xff] %vm178_vm2, %v891_v54  ;;  %1362 = vmatmul.mubr.msk.f32.vlgmr.msra.gmra.mxu1 %vm178_vm2, %v891_v54 }
0x12eb   :  { %v1002_v55 = vld [vmem:[#allocation2 + $0x30] sm:$0xff] }
0x12ec   :  { %1381 = vmatprep.mubr.msk.f32.mxu0 %vm178_vm2, %v1002_v55 }
0x13a4   :  { %v962_v57 = vpop.f32.mrf.mxu1 }
0x13a5   :  { %v966_v58 = vadd.f32 %v962_v57, %v171_v56 }
0x13a6   :  { %v1363_v59 = vpop.f32.mrf.mxu1 }
0x13a7   :  { %1449 = vtanh.f32 %v966_v58  ;;  %v1191_v60 = vmul.f32 -1.442695, %v966_v58 }
0x13a9   :  { %1451 = vpow2.f32 %v1191_v60 }
0x13b4   :  { %v1450_v3 = vpop.eup %1449 }
0x13b5   :  { %976 = vrot.lane.b32.xlu0 %v1450_v3, %s1481_s22 }
0x13b6   :  { %v1452_v61 = vpop.eup %1451 }
0x13b7   :  { %v970_v62 = vadd.f32 1.0, %v1452_v61 }
0x13b9   :  { %1453 = vrcp.f32 %v970_v62 }
0x13c6   :  { %v1454_v8 = vpop.eup %1453 }
0x13c7   :  { %v974_v0 = vmul.f32 %v1454_v8, %v882_v51 }
0x1427   :  { %v977_v63 = vpop.permute.xlu0 %976 }
0x1428   :  { %v979_v10 = vmul.f32 %v1454_v8, %v977_v63 }
0x142a   :  { %981 = vrot.lane.b32.xlu1 %v979_v10, %s1482_s3 }
0x149c   :  { %v982_v5 = vpop.permute.xlu1 %981 }
0x149d   :  { %v984_v15 = vadd.f32 %v982_v5, %v974_v0 }
0x149f   :  { %1455 = vtanh.f32 %v984_v15 }
0x14ac   :  { %v1456_v17 = vpop.eup %1455 }
0x14ad   :  { %987 = vrot.lane.b32.xlu0 %v1456_v17, %s1481_s22 }
0x151f   :  { %v988_v11 = vpop.permute.xlu0 %987 }
0x1520   :  { %v990_v1 = vmul.f32 %v1454_v8, %v988_v11 }
0x1522   :  { %992 = vrot.lane.b32.xlu1 %v990_v1, %s1482_s3 }
0x1594   :  { %v993_v12 = vpop.permute.xlu1 %992 }
0x1595   :  { %995 = vst.msk [vmem:[#allocation2 + $0x38] sm:$0xff] %vm178_vm2, %v993_v12 }
0x159c   :  { %v1003_v2 = vld [vmem:[#allocation2 + $0x38] sm:$0xff] }
0x159d   :  { %1382 = vmatmul.mubr.msk.f32.gmra.mxu0 %vm178_vm2, %v1003_v2 }
0x165d   :  { %v1383_v4 = vpop.f32.mrf.mxu0 }
0x165e   :  { %v1141_v6 = vadd.f32 %v1383_v4, %v1745_v30 }
0x165f   :  { %v1135_v7 = vpop.f32.mrf.mxu0 }
0x1660   :  { %1151 = vst [vmem:[#allocation4 + $0x38] sm:$0xff] %v1141_v6  ;;  %v1136_v9 = vadd.f32 %v1745_v30, %v1135_v7 }
0x1662   :  { %1150 = vst [vmem:[#allocation4 + $0x30] sm:$0xff] %v1136_v9 }
0x1663   :  { %1468 = shalt.err (!%p1465_p4)
}
0x1664   :  { %s1484_s12 = smov 128   ;;  %s1485_s13 = smov 8  }
0x1665   :  { %1163 = dma.vmem_to_hbm [thread:$0]  %s1158_s10, 1024, %s1781_s7, [#allocation5], %s1484_s12, %s1484_s12, %s1485_s13  }
0x1666   :  { %1477 = dma.done.wait [#allocation5], 1024  }
0x1667   :  { %1478 = vsyncadd [#allocation5], 4294966272 }
0x1668   :  { %1167 = vsyncpa [#allocation5], 1 }

</bundles_post_ra>
